<compile_context>
chip_gen: v7x
topology: tpu7x:2x2x1
jax: 0.10.0
libtpu: 0.0.40
codegen_flags: <defaults>
</compile_context>

<pallas_src>
import functools

import jax
import jax.numpy as jnp
from jax.experimental import pallas as pl
from jax.experimental.pallas import tpu as pltpu


# ----------------------------------------------------------------------------
# Helpers
# ----------------------------------------------------------------------------
_VMEM_LIMIT = 48 * 1024 * 1024     # leaves headroom on v7x (64 MiB), well below v5e/v6e


def _cp(*sems):
    return pltpu.CompilerParams(dimension_semantics=tuple(sems),
                                vmem_limit_bytes=_VMEM_LIMIT)


def _pick_tm(M, row_bytes):
    """Row-tile: ~2 MiB per activation buffer, >=2 grid steps when possible, 16-aligned."""
    tm = max(256, (2 << 20) // max(1, row_bytes))
    if M > 16:
        tm = min(tm, -(-M // 2))       # >=2 steps so both v7x TensorCores get work
    if tm >= M:
        return M
    return max(16, (tm // 16) * 16)


def _attn_tn(N, h, L):
    """N-tile for attention: divides N, bounds the f32 score block to ~8 MiB."""
    tn = N
    if N >= 2 and N % 2 == 0:
        tn = N // 2
    while tn > 1 and tn % 2 == 0 and h * tn * L * L * 4 > (8 << 20):
        tn //= 2
    return max(1, tn)


def _opm_lane_tile(Ld):
    """Lane tile of the (L*dp) axes: multiple of 128 or the full axis."""
    if Ld <= 1024:
        return Ld
    for cand in (1024, 512, 256, 128):
        if Ld % cand == 0:
            return cand
    return Ld


def _opm_tn(N):
    """Reduction tile: must divide N exactly; multiple of 16 sublanes unless it spans N."""
    for cand in (128, 64, 32, 16):
        if N % cand == 0 and cand < N:
            return cand
    return N


# ----------------------------------------------------------------------------
# Pallas kernels
# ----------------------------------------------------------------------------
def _linear_kernel(x_ref, w_ref, b_ref, o_ref, *, activation):
    x = x_ref[...].astype(jnp.bfloat16)
    y = jnp.dot(x, w_ref[...], preferred_element_type=jnp.float32) + b_ref[...]
    if activation == "relu":
        y = jnp.maximum(y, 0.0)
    o_ref[...] = y.astype(o_ref.dtype)


def pallas_linear(x, w, b, activation=None, out_dtype=jnp.bfloat16):
    """y = act(x @ w + b); bf16 MXU operands, f32 accumulate, out_dtype store."""
    K = x.shape[-1]
    N = w.shape[-1]
    lead = x.shape[:-1]
    x2 = x.reshape(-1, K)
    M = x2.shape[0]
    row_bytes = K * x2.dtype.itemsize + N * jnp.dtype(out_dtype).itemsize
    TM = _pick_tm(M, row_bytes)
    out = pl.pallas_call(
        functools.partial(_linear_kernel, activation=activation),
        out_shape=jax.ShapeDtypeStruct((M, N), out_dtype),
        grid=(pl.cdiv(M, TM),),
        in_specs=[
            pl.BlockSpec((TM, K), lambda i: (i, 0)),
            pl.BlockSpec((K, N), lambda i: (0, 0)),
            pl.BlockSpec((1, N), lambda i: (0, 0)),
        ],
        out_specs=pl.BlockSpec((TM, N), lambda i: (i, 0)),
        compiler_params=_cp("parallel"),
    )(x2, w.astype(jnp.bfloat16), b.reshape(1, N).astype(jnp.float32))
    return out.reshape(*lead, N)


def _layernorm_kernel(x_ref, g_ref, b_ref, o_ref):
    x = x_ref[...].astype(jnp.float32)
    mu = jnp.mean(x, axis=-1, keepdims=True)
    var = jnp.mean((x - mu) ** 2, axis=-1, keepdims=True)
    xn = (x - mu) * jax.lax.rsqrt(var + 1e-5)
    o_ref[...] = (xn * g_ref[...] + b_ref[...]).astype(o_ref.dtype)


def pallas_layernorm(x, p, out_dtype=None):
    D = x.shape[-1]
    lead = x.shape[:-1]
    x2 = x.reshape(-1, D)
    M = x2.shape[0]
    out_dtype = out_dtype or x.dtype
    TM = _pick_tm(M, 2 * D * x2.dtype.itemsize)
    out = pl.pallas_call(
        _layernorm_kernel,
        out_shape=jax.ShapeDtypeStruct((M, D), out_dtype),
        grid=(pl.cdiv(M, TM),),
        in_specs=[
            pl.BlockSpec((TM, D), lambda i: (i, 0)),
            pl.BlockSpec((1, D), lambda i: (0, 0)),
            pl.BlockSpec((1, D), lambda i: (0, 0)),
        ],
        out_specs=pl.BlockSpec((TM, D), lambda i: (i, 0)),
        compiler_params=_cp("parallel"),
    )(x2, p["g"].reshape(1, D), p["b"].reshape(1, D))
    return out.reshape(*lead, D)


def _ln_linear_kernel(x_ref, g_ref, b_ref, w_ref, bias_ref, o_ref, *, activation):
    x = x_ref[...].astype(jnp.float32)
    mu = jnp.mean(x, axis=-1, keepdims=True)
    var = jnp.mean((x - mu) ** 2, axis=-1, keepdims=True)
    xn = (x - mu) * jax.lax.rsqrt(var + 1e-5) * g_ref[...] + b_ref[...]
    y = jnp.dot(xn.astype(jnp.bfloat16), w_ref[...],
                preferred_element_type=jnp.float32) + bias_ref[...]
    if activation == "relu":
        y = jnp.maximum(y, 0.0)
    o_ref[...] = y.astype(o_ref.dtype)


def pallas_ln_linear(x, ln_p, w, b, activation=None, out_dtype=jnp.bfloat16):
    """y = act(LayerNorm(x) @ w + b), fused in one HBM pass."""
    D = x.shape[-1]
    N = w.shape[-1]
    lead = x.shape[:-1]
    x2 = x.reshape(-1, D)
    M = x2.shape[0]
    row_bytes = D * x2.dtype.itemsize + N * jnp.dtype(out_dtype).itemsize
    TM = _pick_tm(M, row_bytes)
    out = pl.pallas_call(
        functools.partial(_ln_linear_kernel, activation=activation),
        out_shape=jax.ShapeDtypeStruct((M, N), out_dtype),
        grid=(pl.cdiv(M, TM),),
        in_specs=[
            pl.BlockSpec((TM, D), lambda i: (i, 0)),
            pl.BlockSpec((1, D), lambda i: (0, 0)),
            pl.BlockSpec((1, D), lambda i: (0, 0)),
            pl.BlockSpec((D, N), lambda i: (0, 0)),
            pl.BlockSpec((1, N), lambda i: (0, 0)),
        ],
        out_specs=pl.BlockSpec((TM, N), lambda i: (i, 0)),
        compiler_params=_cp("parallel"),
    )(x2, ln_p["g"].reshape(1, D), ln_p["b"].reshape(1, D),
      w.astype(jnp.bfloat16), b.reshape(1, N).astype(jnp.float32))
    return out.reshape(*lead, N)


def _transition_kernel(x_ref, g_ref, b_ref, w1_ref, b1_ref, w2_ref, b2_ref, o_ref):
    x = x_ref[...].astype(jnp.float32)
    mu = jnp.mean(x, axis=-1, keepdims=True)
    var = jnp.mean((x - mu) ** 2, axis=-1, keepdims=True)
    xn = (x - mu) * jax.lax.rsqrt(var + 1e-5) * g_ref[...] + b_ref[...]
    h1 = jnp.dot(xn.astype(jnp.bfloat16), w1_ref[...],
                 preferred_element_type=jnp.float32) + b1_ref[...]
    h1 = jnp.maximum(h1, 0.0)
    h2 = jnp.dot(h1.astype(jnp.bfloat16), w2_ref[...],
                 preferred_element_type=jnp.float32) + b2_ref[...]
    o_ref[...] = (x + h2).astype(o_ref.dtype)   # residual fused; 4x intermediate stays on-chip


def pallas_transition(x, p):
    D = x.shape[-1]
    H = p["lin1"]["w"].shape[-1]
    lead = x.shape[:-1]
    x2 = x.reshape(-1, D)
    M = x2.shape[0]
    row_bytes = 2 * D * x2.dtype.itemsize + H * 4
    TM = _pick_tm(M, row_bytes)
    out = pl.pallas_call(
        _transition_kernel,
        out_shape=jax.ShapeDtypeStruct((M, D), x.dtype),
        grid=(pl.cdiv(M, TM),),
        in_specs=[
            pl.BlockSpec((TM, D), lambda i: (i, 0)),
            pl.BlockSpec((1, D), lambda i: (0, 0)),
            pl.BlockSpec((1, D), lambda i: (0, 0)),
            pl.BlockSpec((D, H), lambda i: (0, 0)),
            pl.BlockSpec((1, H), lambda i: (0, 0)),
            pl.BlockSpec((H, D), lambda i: (0, 0)),
            pl.BlockSpec((1, D), lambda i: (0, 0)),
        ],
        out_specs=pl.BlockSpec((TM, D), lambda i: (i, 0)),
        compiler_params=_cp("parallel"),
    )(x2,
      p["ln"]["g"].reshape(1, D), p["ln"]["b"].reshape(1, D),
      p["lin1"]["w"].astype(jnp.bfloat16), p["lin1"]["b"].reshape(1, H).astype(jnp.float32),
      p["lin2"]["w"].astype(jnp.bfloat16), p["lin2"]["b"].reshape(1, D).astype(jnp.float32))
    return out.reshape(*lead, D)


def _attn_kernel(q_ref, k_ref, v_ref, b_ref, o_ref, *, scale):
    # MSA row self-attention with pair bias; all heads of one (batch, N-tile) per step.
    # The (h, L, L) bias block's index_map ignores the N-tile index so it stays resident
    # in VMEM across the whole N axis (no per-row re-DMA).
    # TODO(synk): add flash-style key tiling (online softmax) for L >~ 512.
    n_head = q_ref.shape[1]
    outs = []
    for hd in range(n_head):
        q = q_ref[0, hd]                          # (TN, L, dh) bf16
        k = k_ref[0, hd]
        v = v_ref[0, hd]
        bias = b_ref[0, hd]                       # (L, L) f32
        s = jnp.einsum("nqd,nkd->nqk", q, k,
                       preferred_element_type=jnp.float32) * scale + bias[None]
        s = s - jnp.max(s, axis=-1, keepdims=True)
        p = jnp.exp(s)
        p = p * pl.reciprocal(jnp.sum(p, axis=-1, keepdims=True), approx=True)
        outs.append(jnp.einsum("nqk,nkd->nqd", p.astype(v.dtype), v,
                               preferred_element_type=jnp.float32))
    # lane-dense store: all heads of the query tile written as one (TN, L, h*dh) slab
    o_ref[0] = jnp.concatenate(outs, axis=-1).astype(o_ref.dtype)


def pallas_attention(q, k, v, bias, scale):
    """q,k,v: (B, h, N, L, dh) bf16; bias: (B, h, L, L) f32 -> (B, N, L, h*dh) bf16."""
    B, h, N, L, dh = q.shape
    TN = _attn_tn(N, h, L)
    return pl.pallas_call(
        functools.partial(_attn_kernel, scale=scale),
        out_shape=jax.ShapeDtypeStruct((B, N, L, h * dh), jnp.bfloat16),
        grid=(B, pl.cdiv(N, TN)),
        in_specs=[
            pl.BlockSpec((1, h, TN, L, dh), lambda b, n: (b, 0, n, 0, 0)),
            pl.BlockSpec((1, h, TN, L, dh), lambda b, n: (b, 0, n, 0, 0)),
            pl.BlockSpec((1, h, TN, L, dh), lambda b, n: (b, 0, n, 0, 0)),
            pl.BlockSpec((1, h, L, L), lambda b, n: (b, 0, 0, 0)),      # resident across N
        ],
        out_specs=pl.BlockSpec((1, TN, L, h * dh), lambda b, n: (b, n, 0, 0)),
        compiler_params=_cp("parallel", "parallel"),
    )(q, k, v, bias)


def _opm_kernel(a_ref, b_ref, o_ref, acc_ref, *, inv_n):
    @pl.when(pl.program_id(3) == 0)
    def _():
        acc_ref[...] = jnp.zeros_like(acc_ref)
    acc_ref[...] += jax.lax.dot_general(
        a_ref[0], b_ref[0], (((0,), (0,)), ((), ())),
        preferred_element_type=jnp.float32)

    @pl.when(pl.program_id(3) == pl.num_programs(3) - 1)
    def _():
        o_ref[0] = (acc_ref[...] * inv_n).astype(o_ref.dtype)


def pallas_opm(a2, b2):
    """a2,b2: (B, N, L*dp) bf16 -> (B, L*dp, L*dp) bf16 = mean_n a[:,n,:]^T b[:,n,:].

    Tiled reduction over N with an f32 VMEM accumulator; (i, j) axes are parallel so
    v7x's 2 TensorCores get independent work at realistic sizes."""
    B, N, Ld = a2.shape
    TI = _opm_lane_tile(Ld)
    TJ = _opm_lane_tile(Ld)
    TN = _opm_tn(N)
    return pl.pallas_call(
        functools.partial(_opm_kernel, inv_n=1.0 / float(N)),
        out_shape=jax.ShapeDtypeStruct((B, Ld, Ld), jnp.bfloat16),
        grid=(B, pl.cdiv(Ld, TI), pl.cdiv(Ld, TJ), pl.cdiv(N, TN)),
        in_specs=[
            pl.BlockSpec((1, TN, TI), lambda b, i, j, n: (b, n, i)),
            pl.BlockSpec((1, TN, TJ), lambda b, i, j, n: (b, n, j)),
        ],
        out_specs=pl.BlockSpec((1, TI, TJ), lambda b, i, j, n: (b, i, j)),
        scratch_shapes=[pltpu.VMEM((TI, TJ), jnp.float32)],
        compiler_params=_cp("parallel", "parallel", "parallel", "arbitrary"),
    )(a2, b2)


# ----------------------------------------------------------------------------
# Parameter initialization (deterministic, synthetic; weights pre-cast to bf16)
# ----------------------------------------------------------------------------
class KeyGen:
    def __init__(self, key):
        self.key = key
        self.i = 0

    def __call__(self):
        self.i += 1
        return jax.random.fold_in(self.key, self.i)


def _lin(key, k_in, k_out, scale=0.02):
    w = jax.random.normal(key, (k_in, k_out), jnp.float32) * scale
    return {"w": w.astype(jnp.bfloat16), "b": jnp.zeros((k_out,), jnp.float32)}


def _ln(d):
    return {"g": jnp.ones((d,), jnp.float32), "b": jnp.zeros((d,), jnp.float32)}


def _make_block(kg, d_in, cfg):
    d_pair, d_state = cfg["d_pair"], cfg["d_state"]
    h, dh, dp = cfg["n_head_msa"], cfg["d_head"], cfg["d_opm"]
    return dict(
        attn=dict(
            ln_msa=_ln(d_in), ln_pair=_ln(d_pair),
            to_q=_lin(kg(), d_in, h * dh), to_k=_lin(kg(), d_in, h * dh),
            to_v=_lin(kg(), d_in, h * dh), to_bias=_lin(kg(), d_pair, h),
            to_out=_lin(kg(), h * dh, d_in),
        ),
        msa_ff=dict(ln=_ln(d_in), lin1=_lin(kg(), d_in, 4 * d_in),
                    lin2=_lin(kg(), 4 * d_in, d_in)),
        opm=dict(ln=_ln(d_in), proj_a=_lin(kg(), d_in, dp),
                 proj_b=_lin(kg(), d_in, dp),
                 proj_out=_lin(kg(), dp * dp, d_pair)),
        pair_ff=dict(ln=_ln(d_pair), lin1=_lin(kg(), d_pair, 2 * d_pair),
                     lin2=_lin(kg(), 2 * d_pair, d_pair)),
        state=dict(ln=_ln(d_in + d_state), proj=_lin(kg(), d_in + d_state, d_state)),
        struct=dict(ln=_ln(d_state), to_rot=_lin(kg(), d_state, 6),
                    to_trans=_lin(kg(), d_state, 3), to_alpha=_lin(kg(), d_state, 20)),
    )


def init_params(key, cfg):
    kg = KeyGen(key)
    d_msa, d_msa_full = cfg["d_msa"], cfg["d_msa_full"]
    d_pair, d_state, d_templ = cfg["d_pair"], cfg["d_state"], cfg["d_templ"]
    nt = cfg["n_tokens"]
    P = {}
    P["latent_emb"] = dict(
        emb=_lin(kg(), cfg["d_init_msa"], d_msa),
        emb_q=_lin(kg(), nt, d_msa),
        emb_left=_lin(kg(), nt, d_pair),
        emb_right=_lin(kg(), nt, d_pair),
        emb_state=_lin(kg(), nt, d_state),
        pos=_lin(kg(), 65, d_pair),
    )
    P["full_emb"] = dict(
        emb=_lin(kg(), cfg["d_init_full"], d_msa_full),
        emb_q=_lin(kg(), nt, d_msa_full),
    )
    P["recycle"] = dict(
        norm_msa=_ln(d_msa), norm_pair=_ln(d_pair), norm_state=_ln(d_state),
        proj_dist=_lin(kg(), 36, d_pair),
    )
    P["templ_emb"] = dict(
        emb=_lin(kg(), 2 * cfg["d_t1d"] + cfg["d_t2d"], d_templ),
        to_pair=_lin(kg(), d_templ, d_pair),
        to_state=_lin(kg(), cfg["d_t1d"] + 30, d_state),
    )
    P["simulator"] = dict(
        extra_blocks=[_make_block(kg, d_msa_full, cfg) for _ in range(cfg["n_extra_block"])],
        main_blocks=[_make_block(kg, d_msa, cfg) for _ in range(cfg["n_main_block"])],
        ref_blocks=[_make_block(kg, d_msa, cfg) for _ in range(cfg["n_ref_block"])],
    )
    P["c6d_pred"] = dict(proj_symm=_lin(kg(), d_pair, 74),
                         proj_asymm=_lin(kg(), d_pair, 56))
    P["aa_pred"] = dict(proj=_lin(kg(), d_msa, 21))
    P["lddt_pred"] = dict(norm=_ln(d_state), proj=_lin(kg(), d_state, 50))
    P["exp_pred"] = dict(norm_msa=_ln(d_msa), norm_state=_ln(d_state),
                         proj=_lin(kg(), d_msa + d_state, 1))
    return P


# ----------------------------------------------------------------------------
# Module pieces
# ----------------------------------------------------------------------------
def rbf(d, d_min=2.0, d_max=22.0, n_bins=36):
    centers = jnp.linspace(d_min, d_max, n_bins)
    sigma = (d_max - d_min) / n_bins
    return jnp.exp(-(((d[..., None] - centers) / sigma) ** 2))


def latent_emb(msa_latent, seq, idx, p, cfg):
    # TODO(synk): cyclic_reses (cyclic-offset positional correction) not wired.
    d_msa, d_pair = cfg["d_msa"], cfg["d_pair"]
    msa = pallas_linear(msa_latent, **p["emb"])                        # (B,N,L,d_msa) bf16
    # seq one-hot @ W == W[seq]: one fused gather instead of four one-hot matmuls
    w_cat = jnp.concatenate([p["emb_q"]["w"], p["emb_left"]["w"],
                             p["emb_right"]["w"], p["emb_state"]["w"]], axis=1)
    b_cat = jnp.concatenate([p["emb_q"]["b"], p["emb_left"]["b"],
                             p["emb_right"]["b"], p["emb_state"]["b"]], axis=0)
    fused = jnp.take(w_cat, seq, axis=0) + b_cat.astype(w_cat.dtype)   # (B,L,...)
    q_e = fused[..., :d_msa]
    left = fused[..., d_msa:d_msa + d_pair]
    right = fused[..., d_msa + d_pair:d_msa + 2 * d_pair]
    state = fused[..., d_msa + 2 * d_pair:]
    msa = msa + q_e[:, None]
    pair = left[:, :, None, :] + right[:, None, :, :]
    # relpos: gather the (65, d_pair) table instead of a one-hot(65) matmul
    rel = jnp.clip(idx[:, :, None] - idx[:, None, :], -32, 32) + 32
    pair = pair + (jnp.take(p["pos"]["w"], rel, axis=0)
                   + p["pos"]["b"].astype(p["pos"]["w"].dtype))
    return msa, pair, state


def full_emb(msa_full, seq, idx, p, cfg):
    m = pallas_linear(msa_full, **p["emb"])
    q_e = jnp.take(p["emb_q"]["w"], seq, axis=0) + p["emb_q"]["b"].astype(jnp.bfloat16)
    return m + q_e[:, None]


def recycling(seq, msa_prev, pair_prev, xyz, state_prev, p):
    msa_r = pallas_layernorm(msa_prev, p["norm_msa"])
    pair_r = pallas_layernorm(pair_prev, p["norm_pair"])
    state_r = pallas_layernorm(state_prev, p["norm_state"])
    ca = xyz[:, :, 1]
    d = jnp.sqrt(jnp.sum((ca[:, :, None] - ca[:, None, :]) ** 2, -1) + 1e-8)
    pair_r = pair_r + pallas_linear(rbf(d), **p["proj_dist"])
    return msa_r, pair_r, state_r


def templ_emb(t1d, t2d, alpha_t, xyz_t, pair, state, p):
    # split the embedding weight instead of materializing concat([t2d, left, right])
    d_t2d = t2d.shape[-1]
    d_t1d = t1d.shape[-1]
    W, b = p["emb"]["w"], p["emb"]["b"]
    w_2d, w_l, w_r = W[:d_t2d], W[d_t2d:d_t2d + d_t1d], W[d_t2d + d_t1d:]
    zeros = jnp.zeros_like(b)
    proj_2d = pallas_linear(t2d, w_2d, b)                    # (B,Nt,L,L,d_templ) bf16
    proj_l = pallas_linear(t1d, w_l, zeros)                  # (B,Nt,L,d_templ)
    proj_r = pallas_linear(t1d, w_r, zeros)
    templ = jax.nn.relu(proj_2d + proj_l[:, :, :, None, :] + proj_r[:, :, None, :, :])
    # TODO(synk): template point-wise attention over templates replaced by mean pooling.
    templ_pooled = jnp.mean(templ, axis=1)
    pair = pair + pallas_linear(templ_pooled, **p["to_pair"])
    s_feat = jnp.concatenate([t1d, alpha_t], axis=-1)
    state = state + jnp.mean(pallas_linear(s_feat, **p["to_state"]), axis=1)
    return pair, state


def msa_row_attention(msa, pair, p, cfg):
    B, N, L, _ = msa.shape
    h, dh = cfg["n_head_msa"], cfg["d_head"]
    # fused LayerNorm + concatenated QKV projection (one HBM pass over the MSA, bf16 out)
    w_qkv = jnp.concatenate([p["to_q"]["w"], p["to_k"]["w"], p["to_v"]["w"]], axis=1)
    b_qkv = jnp.concatenate([p["to_q"]["b"], p["to_k"]["b"], p["to_v"]["b"]], axis=0)
    qkv = pallas_ln_linear(msa, p["ln_msa"], w_qkv, b_qkv)            # (B,N,L,3*h*dh) bf16
    # fused LayerNorm + pair-bias projection (output is small: B*L*L*h floats)
    bias = pallas_ln_linear(pair, p["ln_pair"], p["to_bias"]["w"], p["to_bias"]["b"],
                            out_dtype=jnp.float32)                    # (B,L,L,h) f32

    # head split done in bf16 (half the transpose traffic vs f32)
    qkv = qkv.reshape(B, N, L, 3, h, dh)
    qkv = jnp.transpose(qkv, (3, 0, 4, 1, 2, 5))                      # (3,B,h,N,L,dh)
    q, k, v = qkv[0], qkv[1], qkv[2]
    bias = jnp.transpose(bias, (0, 3, 1, 2))                          # (B,h,L,L)
    out = pallas_attention(q, k, v, bias, scale=1.0 / (float(dh) ** 0.5))  # (B,N,L,h*dh) bf16
    return msa + pallas_linear(out, **p["to_out"])


def outer_product_mean(msa, p, cfg):
    B, N, L, _ = msa.shape
    dp = cfg["d_opm"]
    # fused LayerNorm + concatenated a/b projections, bf16 out
    w_ab = jnp.concatenate([p["proj_a"]["w"], p["proj_b"]["w"]], axis=1)
    b_ab = jnp.concatenate([p["proj_a"]["b"], p["proj_b"]["b"]], axis=0)
    ab = pallas_ln_linear(msa, p["ln"], w_ab, b_ab)                   # (B,N,L,2*dp) bf16
    a2 = ab[..., :dp].reshape(B, N, L * dp)
    b2 = ab[..., dp:].reshape(B, N, L * dp)
    o = pallas_opm(a2, b2)                                            # (B, L*dp, L*dp) bf16
    # relayout to (B, L, L, dp*dp) feature-major form for the output projection.
    # TODO(synk): fuse proj_out into the OPM kernel's final reduction step so this HBM
    # relayout of the (L*dp)^2 tensor disappears at production sizes.
    o = o.reshape(B, L, dp, L, dp).transpose(0, 1, 3, 2, 4).reshape(B, L, L, dp * dp)
    return pallas_linear(o, **p["proj_out"])


def state_update(msa0, state, p):
    x = jnp.concatenate([msa0, state], axis=-1)
    return state + pallas_ln_linear(x, p["ln"], p["proj"]["w"], p["proj"]["b"])


def structure_head(state, p, is_frozen):
    # TODO(synk): SE3-equivariant graph transformer (spherical harmonics / radial bases)
    # has no clean Pallas equivalent; replaced with a per-residue linear frame head.
    B, L, _ = state.shape
    w_cat = jnp.concatenate([p["to_rot"]["w"], p["to_trans"]["w"], p["to_alpha"]["w"]], axis=1)
    b_cat = jnp.concatenate([p["to_rot"]["b"], p["to_trans"]["b"], p["to_alpha"]["b"]], axis=0)
    out = pallas_ln_linear(state, p["ln"], w_cat, b_cat, out_dtype=jnp.float32)  # (B,L,29)
    rot6 = out[..., 0:6]
    trans = out[..., 6:9] * 0.1
    alpha = out[..., 9:29].reshape(B, L, 10, 2)
    a1 = rot6[..., 0:3] + jnp.array([1.0, 0.0, 0.0])
    a2 = rot6[..., 3:6] + jnp.array([0.0, 1.0, 0.0])
    e1 = a1 / jnp.sqrt(jnp.sum(a1 * a1, -1, keepdims=True) + 1e-8)
    u2 = a2 - jnp.sum(e1 * a2, -1, keepdims=True) * e1
    e2 = u2 / jnp.sqrt(jnp.sum(u2 * u2, -1, keepdims=True) + 1e-8)
    e3 = jnp.cross(e1, e2)
    R = jnp.stack([e1, e2, e3], axis=-2)                          # (B, L, 3, 3)
    frozen = is_frozen[..., None, None]
    R = jnp.where(frozen, jnp.eye(3, dtype=R.dtype), R)
    T = jnp.where(is_frozen[..., None], 0.0, trans)
    return R, T, alpha


def run_block(msa, pair, state, blk, cfg, is_frozen):
    msa = msa_row_attention(msa, pair, blk["attn"], cfg)
    msa = pallas_transition(msa, blk["msa_ff"])
    pair = pair + outer_product_mean(msa, blk["opm"], cfg)
    pair = pallas_transition(pair, blk["pair_ff"])
    state = state_update(msa[:, 0], state, blk["state"])
    R, T, alpha = structure_head(state, blk["struct"], is_frozen)
    return msa, pair, state, R, T, alpha


def simulator(seq, msa, msa_full, pair, xyz3, state, idx, p, cfg, is_frozen):
    R_s, T_s, alpha_s = [], [], []
    for blk in p["extra_blocks"]:
        msa_full, pair, state, R, T, alpha = run_block(msa_full, pair, state, blk, cfg, is_frozen)
        R_s.append(R); T_s.append(T); alpha_s.append(alpha)
    for blk in p["main_blocks"]:
        msa, pair, state, R, T, alpha = run_block(msa, pair, state, blk, cfg, is_frozen)
        R_s.append(R); T_s.append(T); alpha_s.append(alpha)
    for blk in p["ref_blocks"]:
        msa, pair, state, R, T, alpha = run_block(msa, pair, state, blk, cfg, is_frozen)
        R_s.append(R); T_s.append(T); alpha_s.append(alpha)
    return msa, pair, jnp.stack(R_s), jnp.stack(T_s), jnp.stack(alpha_s), state


def c6d_pred(pair, p):
    # fuse the two heads into one matmul over the pair tensor (f32 logits out)
    w_cat = jnp.concatenate([p["proj_symm"]["w"], p["proj_asymm"]["w"]], axis=1)
    b_cat = jnp.concatenate([p["proj_symm"]["b"], p["proj_asymm"]["b"]], axis=0)
    out = pallas_linear(pair, w_cat, b_cat, out_dtype=jnp.float32)    # (B, L, L, 130)
    logits_symm = out[..., :74]
    logits_asymm = out[..., 74:]
    logits_theta = jnp.transpose(logits_asymm[..., :37], (0, 3, 1, 2))
    logits_phi = jnp.transpose(logits_asymm[..., 37:], (0, 3, 1, 2))
    logits_symm = logits_symm + jnp.transpose(logits_symm, (0, 2, 1, 3))
    logits_dist = jnp.transpose(logits_symm[..., :37], (0, 3, 1, 2))
    logits_omega = jnp.transpose(logits_symm[..., 37:], (0, 3, 1, 2))
    return logits_dist, logits_omega, logits_theta, logits_phi


def aa_pred(msa, p):
    B, N, L, _ = msa.shape
    logits = pallas_linear(msa, **p["proj"], out_dtype=jnp.float32)   # (B, N, L, 21)
    return jnp.transpose(logits, (0, 3, 1, 2)).reshape(B, 21, N * L)


def lddt_pred(state, p):
    logits = pallas_ln_linear(state, p["norm"], p["proj"]["w"], p["proj"]["b"],
                              out_dtype=jnp.float32)
    return jnp.transpose(logits, (0, 2, 1))


def exp_pred(msa0, state, p):
    m = pallas_layernorm(msa0, p["norm_msa"])
    s = pallas_layernorm(state, p["norm_state"])
    logits = pallas_linear(jnp.concatenate([m, s], axis=-1), **p["proj"],
                           out_dtype=jnp.float32)
    return logits[..., 0]


# ----------------------------------------------------------------------------
# Full forward
# ----------------------------------------------------------------------------
def rosettafold_forward(params, cfg, msa_latent, msa_full_in, seq, xyz, idx, t,
                        t1d=None, t2d=None, xyz_t=None, alpha_t=None,
                        msa_prev=None, pair_prev=None, state_prev=None,
                        return_raw=False, return_infer=False,
                        motif_mask=None, cyclic_reses=None):
    B, N, L = msa_latent.shape[:3]
    msa, pair, state = latent_emb(msa_latent, seq, idx, params["latent_emb"], cfg)
    msa_f = full_emb(msa_full_in, seq, idx, params["full_emb"], cfg)

    if msa_prev is None:
        msa_prev = jnp.zeros_like(msa[:, 0])
        pair_prev = jnp.zeros_like(pair)
        state_prev = jnp.zeros_like(state)
    msa_rec, pair_rec, state_rec = recycling(seq, msa_prev, pair_prev, xyz,
                                             state_prev, params["recycle"])
    msa = msa.at[:, 0].add(msa_rec.reshape(B, L, -1))
    pair = pair + pair_rec
    state = state + state_rec

    # (no timestep_embedder attribute in this configuration -> skipped, as in reference)
    pair, state = templ_emb(t1d, t2d, alpha_t, xyz_t, pair, state, params["templ_emb"])

    is_frozen = motif_mask if cfg["freeze_track_motif"] else jnp.zeros_like(motif_mask)
    msa, pair, R, T, alpha_s, state = simulator(
        seq, msa, msa_f, pair, xyz[:, :, :3], state, idx,
        params["simulator"], cfg, is_frozen)

    xyz_local = xyz[:, :, :3] - xyz[:, :, 1:2]                    # (B, L, 3, 3)
    if return_raw:
        xyz_o = jnp.einsum('bnij,bnaj->bnai', R[-1], xyz_local) + T[-1][:, :, None, :]
        return msa[:, 0], pair, xyz_o, state, alpha_s[-1]

    logits_aa = aa_pred(msa, params["aa_pred"])
    lddt = lddt_pred(state, params["lddt_pred"])
    if return_infer:
        xyz_o = jnp.einsum('bnij,bnaj->bnai', R[-1], xyz_local) + T[-1][:, :, None, :]
        nbin = lddt.shape[1]
        lddt_bins = jnp.linspace(1.0 / nbin, 1.0, nbin, dtype=lddt.dtype)
        pred_lddt = jax.nn.softmax(lddt, axis=1)
        pred_lddt = jnp.sum(lddt_bins[None, :, None] * pred_lddt, axis=1)
        return (msa[:, 0], pair, xyz_o, state, alpha_s[-1],
                jnp.transpose(logits_aa, (0, 2, 1)), pred_lddt)

    logits = c6d_pred(pair, params["c6d_pred"])
    logits_exp = exp_pred(msa[:, 0], state, params["exp_pred"])
    xyz_out = jnp.einsum('rbnij,bnaj->rbnai', R, xyz_local) + T[:, :, :, None, :]
    return logits, logits_aa, logits_exp, xyz_out, alpha_s, lddt


# ----------------------------------------------------------------------------
# Main
# ----------------------------------------------------------------------------
if __name__ == "__main__":
    cfg = dict(
        n_extra_block=1, n_main_block=1, n_ref_block=1,
        d_msa=32, d_msa_full=16, d_pair=32, d_templ=16,
        n_head_msa=4, n_head_pair=4, n_head_templ=2,
        d_hidden=16, d_hidden_templ=8,
        d_t1d=22, d_t2d=44,
        d_state=16,            # SE3_param_topk['l0_out_features']
        d_init_msa=48, d_init_full=25, n_tokens=22,
        d_head=8, d_opm=8,
        freeze_track_motif=False,
    )
    params = init_params(jax.random.PRNGKey(0), cfg)

    B, N, Nf, L, Nt, n_atoms = 1, 4, 6, 16, 2, 14
    ks = iter(jax.random.split(jax.random.PRNGKey(0), 16))
    msa_latent = jax.random.normal(next(ks), (B, N, L, cfg["d_init_msa"]), jnp.float32)
    msa_full = jax.random.normal(next(ks), (B, Nf, L, cfg["d_init_full"]), jnp.float32)
    seq = jax.random.randint(next(ks), (B, L), 0, cfg["n_tokens"])
    xyz = jax.random.normal(next(ks), (B, L, n_atoms, 3), jnp.float32) * 3.0
    idx = jnp.broadcast_to(jnp.arange(L, dtype=jnp.int32), (B, L))
    t = jnp.array(10, jnp.int32)
    t1d = jax.random.normal(next(ks), (B, Nt, L, cfg["d_t1d"]), jnp.float32)
    t2d = jax.random.normal(next(ks), (B, Nt, L, L, cfg["d_t2d"]), jnp.float32)
    xyz_t = jax.random.normal(next(ks), (B, Nt, L, 3), jnp.float32)
    alpha_t = jax.random.normal(next(ks), (B, Nt, L, 30), jnp.float32)
    motif_mask = jnp.zeros((B, L), bool)

    out = rosettafold_forward(params, cfg, msa_latent, msa_full, seq, xyz, idx, t,
                              t1d=t1d, t2d=t2d, xyz_t=xyz_t, alpha_t=alpha_t,
                              motif_mask=motif_mask)
    out = jax.tree_util.tree_map(jax.block_until_ready, out)

    logits, logits_aa, logits_exp, xyz_out, alpha_s, lddt = out
    n_blocks = cfg["n_extra_block"] + cfg["n_main_block"] + cfg["n_ref_block"]
    assert logits[0].shape == (B, 37, L, L)
    assert logits[3].shape == (B, 19, L, L)
    assert logits_aa.shape == (B, 21, N * L)
    assert logits_exp.shape == (B, L)
    assert xyz_out.shape == (n_blocks, B, L, 3, 3)
    assert alpha_s.shape == (n_blocks, B, L, 10, 2)
    assert lddt.shape == (B, 50, L)
    assert all(bool(jnp.all(jnp.isfinite(x))) for x in jax.tree_util.tree_leaves(out))
    print("KERNEL_OK")
</pallas_src>

<mosaic_0001>
module attributes {stable_mosaic.version = 11 : i64} {
  func.func @_linear_kernel(%arg0: i32, %arg1: memref<32x48xf32, #tpu.memory_space<vmem>>, %arg2: memref<48x32xbf16, #tpu.memory_space<vmem>>, %arg3: memref<1x32xf32, #tpu.memory_space<vmem>>, %arg4: memref<32x32xbf16, #tpu.memory_space<vmem>>) attributes {dimension_semantics = [#tpu.dimension_semantics<parallel>], iteration_bounds = array<i64: 2>, scalar_prefetch = 0 : i64, scratch_operands = 0 : i64, tpu.core_type = #tpu.core_type<tc>, window_params = [{transform_indices = @transform_0, window_bounds = array<i64: 32, 48>}, {pipeline_mode = #tpu.pipeline_mode<synchronous>, transform_indices = @transform_1, window_bounds = array<i64: 48, 32>}, {pipeline_mode = #tpu.pipeline_mode<synchronous>, transform_indices = @transform_2, window_bounds = array<i64: 1, 32>}, {transform_indices = @transform_3, window_bounds = array<i64: 32, 32>}]} {
    %c0 = arith.constant 0 : index
    %c0_0 = arith.constant 0 : index
    %0 = vector.load %arg1[%c0, %c0_0] : memref<32x48xf32, #tpu.memory_space<vmem>>, vector<32x48xf32>
    %1 = arith.truncf %0 : vector<32x48xf32> to vector<32x48xbf16>
    %c0_1 = arith.constant 0 : index
    %c0_2 = arith.constant 0 : index
    %2 = vector.load %arg2[%c0_1, %c0_2] : memref<48x32xbf16, #tpu.memory_space<vmem>>, vector<48x32xbf16>
    %cst = arith.constant dense<0.000000e+00> : vector<32x32xf32>
    %3 = tpu.matmul %1, %2, %cst {dimension_numbers = #tpu.dot_dimension_numbers<[1], [0], [0], [1], [0, 0, 1, 1], [], []>} : vector<32x48xbf16>, vector<48x32xbf16>, vector<32x32xf32> -> vector<32x32xf32>
    %c0_3 = arith.constant 0 : index
    %c0_4 = arith.constant 0 : index
    %4 = vector.load %arg3[%c0_3, %c0_4] : memref<1x32xf32, #tpu.memory_space<vmem>>, vector<1x32xf32>
    %5 = vector.broadcast %4 : vector<1x32xf32> to vector<32x32xf32>
    %6 = arith.addf %3, %5 : vector<32x32xf32>
    %7 = arith.truncf %6 : vector<32x32xf32> to vector<32x32xbf16>
    %c0_5 = arith.constant 0 : index
    %c0_6 = arith.constant 0 : index
    %8 = vector.load %arg4[%c0_5, %c0_6] : memref<32x32xbf16, #tpu.memory_space<vmem>>, vector<32x32xbf16>
    tpu.vector_store %arg4[%c0_5, %c0_6], %7 {strides = array<i32>} : memref<32x32xbf16, #tpu.memory_space<vmem>>, vector<32x32xbf16>,
    return
  }
  func.func @transform_0(%arg0: i32) -> (i32, i32) {
    %c0_i32 = arith.constant 0 : i32
    %c0_i32_0 = arith.constant 0 : i32
    return %arg0, %c0_i32 : i32, i32
  }
  func.func @transform_1(%arg0: i32) -> (i32, i32) {
    %c0_i32 = arith.constant 0 : i32
    %c0_i32_0 = arith.constant 0 : i32
    %c0_i32_1 = arith.constant 0 : i32
    return %c0_i32, %c0_i32_0 : i32, i32
  }
  func.func @transform_2(%arg0: i32) -> (i32, i32) {
    %c0_i32 = arith.constant 0 : i32
    %c0_i32_0 = arith.constant 0 : i32
    %c0_i32_1 = arith.constant 0 : i32
    return %c0_i32, %c0_i32_0 : i32, i32
  }
  func.func @transform_3(%arg0: i32) -> (i32, i32) {
    %c0_i32 = arith.constant 0 : i32
    %c0_i32_0 = arith.constant 0 : i32
    return %arg0, %c0_i32 : i32, i32
  }
}

</mosaic_0001>

<bundles_post_ra>
// kernel: tpu_custom_call.1
= control target key start
LH: loop header
LB: loop body
LE: loop exit
PB: predicated region body
PF: predicated region fallthrough
CT: control target
= control target key end

     0   :  { %s424_s12 = smov 0   ;;  %s453_s0 = inlined_call_operand.vmem [shape: f32[64,48], index: 0, kind: input, shape index: {}]   ;;  %s454_s1 = inlined_call_operand.vmem [shape: bf16[48,32], index: 1, kind: input, shape index: {}]   ;;  %s455_s2 = inlined_call_operand.vmem [shape: f32[1,32], index: 2, kind: input, shape index: {}]   ;;  %s456_s3 = inlined_call_operand.vmem [shape: bf16[64,32], index: 3, kind: output, shape index: {}]  }
   0x1 LB: > { %s345_s13 = sadd.s32 4294967295, %s402_s12   ;;  %p349_p0 = scmp.ge.s32.totalorder %s402_s12, 1  ;;  %s402_s12 = sphi %s424_s12, %s13_s12  }
   0x2   : > { %p138_p1 = scmp.lt.s32.totalorder %s402_s12, 3 }
   0x4   : > { %p139_p2 = pnand %p349_p0, %p138_p1 }
   0x5   : > { %v393_v0 = vld [vmem:[%s454_s1] sm:$0xff] (!%p139_p2)   ;;  %s350_s16 = sshll.u32 (!%p139_p2), %s345_s13, 2  ;;  %v394_v1 = vld [vmem:[%s454_s1 + $0x8] sm:$0xff] (!%p139_p2)   ;;  %v395_v2 = vld [vmem:[%s454_s1 + $0x10] sm:$0xff] (!%p139_p2)   ;;  %vm212_vm0 = vcmask (!%p139_p2), 392192   ;;  %vm284_vm1 = vcmask (!%p139_p2), 257024  }
   0x6   : > { %142 = sbr.rel (%p139_p2) target bundleno = 240 (0xf0), region = 32  ;;  %p163_p3 = scmp.lt.s32.totalorder (!%p139_p2), %s350_s16, 7  ;;  %375 = vmatprep.subr.bf16.mxu0 (!%p139_p2), %v393_v0  ;;  %v354_v9 = vld [vmem:[%s455_s2] ss:$0 sm:$0xff] (!%p139_p2) }
   0x7   : > { %376 = vmatpush3.bf16.msra.mxu0 (!%p139_p2), %v393_v0 }
   0x8   : > { %377 = vmatprep.subr.bf16.mxu0 (!%p139_p2), %v394_v1 }
   0xb   : > { %378 = vmatpush3.bf16.msra.mxu0 (!%p139_p2), %v394_v1 }
   0xc   : > { %379 = vmatprep.subr.bf16.mxu0 (!%p139_p2), %v395_v2 }
   0xd   : > { %s458_s16 = smov (!%p163_p3, %s350_s16), 7 }
   0xe   : > { %s351_s21 = sshll.u32 %s458_s16, 3  ;;  %s353_s27 = sshll.u32 %s458_s16, 2 }
   0xf   : > { %s166_s24 = scalar_lea.vmem %s453_s0, %s351_s21  ;;  %380 = vmatpush3.bf16.msra.mxu0 %v395_v2  ;;  %s172_s30 = scalar_lea.vmem %s456_s3, %s353_s27 }
  0x10   : > { %v175_v3 = vld [vmem:[%s166_s24] sm:$0xff]  ;;  %v176_v4 = vld [vmem:[%s166_s24 + $0x8] sm:$0xff]  ;;  %v177_v5 = vld [vmem:[%s166_s24 + $0x10] sm:$0xff] }
  0x11   : > { %v179_v6 = vpack.c.bf16 %v176_v4, %v175_v3  ;;  %v178_v7 = vld [vmem:[%s166_s24 + $0x18] sm:$0xff] }
  0x12   : > { %v180_v8 = vpack.c.bf16 %v178_v7, %v177_v5 }
  0x13   : > { %381 = vmatprep.mubr.msk.bf16.mxu0 %vm212_vm0, %v179_v6 }
  0x14   : > { %382 = vmatmul.mubr.msk.bf16.vlgmr.msra.gmra.mrb[0].mxu0 %vm212_vm0, %v180_v8 }
  0xe7   : > { %v383_v10 = vpop.f32.mrb[0].mxu0 }
  0xe8   : > { %v253_v11 = vpop.f32.mrb[1].mxu0  ;;  %v262_v14 = vadd.f32 %v383_v10, %v354_v9 }
  0xe9   : > { %v254_v12 = vadd.f32 %v354_v9, %v253_v11  ;;  %v384_v13 = vpop.f32.mrb[2].mxu0 }
  0xea   : > { %v256_v15 = vpop.f32.mrb[3].mxu0  ;;  %v265_v17 = vadd.f32 %v384_v13, %v354_v9  ;;  %v368_v20 = vpack.c.bf16 %v262_v14, %v262_v14 }
  0xeb   : > { %v366_v16 = vpack.c.bf16 %v254_v12, %v254_v12  ;;  %v257_v18 = vadd.f32 %v354_v9, %v256_v15 }
  0xec   : > { %v369_v21 = vpack.c.bf16 %v265_v17, %v265_v17  ;;  %287 = vst.msk [vmem:[%s172_s30 + $0x8] sm:$0xf] %vm284_vm1, %v368_v20 }
  0xed   : > { %285 = vst.msk [vmem:[%s172_s30] sm:$0xf] %vm284_vm1, %v366_v16  ;;  %v367_v19 = vpack.c.bf16 %v257_v18, %v257_v18 }
  0xee   : > { %288 = vst.msk [vmem:[%s172_s30 + $0xc] sm:$0xf] %vm284_vm1, %v369_v21 }
  0xef   : > { %286 = vst.msk [vmem:[%s172_s30 + $0x4] sm:$0xf] %vm284_vm1, %v367_v19 }
  0xf0 PF: > { %s13_s12 = sadd.s32 1, %s402_s12  }
  0xf1   : > { %p10_p4 = scmp.ge.s32.totalorder %s13_s12, 4  }
  0xf3   :  { %12 = sbr.rel (!%p10_p4) target bundleno = 1 (0x1), region = 62 }

</bundles_post_ra>
